<compile_context>
chip_gen: v7x
topology: tpu7x:2x2x1
jax: 0.10.0
libtpu: 0.0.40
codegen_flags: <defaults>
</compile_context>

<pallas_src>
import jax
import jax.numpy as jnp
from jax.experimental import pallas as pl
from jax.experimental.pallas import tpu as pltpu

HID_PAD = 128  # hidden features padded (at init) to one full lane width


def _round_up(n, m):
    return ((n + m - 1) // m) * m


def _choose_batch_tile(B, tb_max=4096):
    """Pick the batch tile.  Small B: one block covering the whole batch (block dims
    equal the array dims, always layout-legal).  Large B: a multiple of 8, capped at
    tb_max, aiming for >= 2 grid steps (v7x has 2 TensorCores)."""
    if B <= 1024:
        return B
    half = -(-B // 2)
    return min(tb_max, _round_up(half, 8))


def fractional_net_kernel(x_ref, w1_ref, b1_ref, w2_ref, b2_ref, o_ref):
    # fc1 on the MXU: (TB, K) @ (K, HID_PAD) -> (TB, HID_PAD), lane-dense.
    h = jnp.dot(x_ref[...], w1_ref[...], preferred_element_type=jnp.float32)
    h = jnp.maximum(h + b1_ref[...], 0.0)                 # bias broadcast + ReLU (VPU)
    # fc2 (out_features == 1) in transposed orientation:
    # (1, HID_PAD) contracted with (TB, HID_PAD) over the lane dim -> (1, TB) row.
    # This yields the lane-dense output directly (no (TB,1) masked stores) and uses
    # MXU slack instead of a VPU multiply + XLU lane-reduction.
    y = jax.lax.dot_general(
        w2_ref[...], h,
        dimension_numbers=(((1,), (1,)), ((), ())),
        preferred_element_type=jnp.float32)
    o_ref[...] = (y + b2_ref[0, 0])[None]                 # (1, 1, TB), scalar bias from SMEM


def prepare_fractional_net_params(w1, b1, w2, b2):
    """One-time layout work (done at 'init', never per forward call): transpose
    weights to [in, out], cast to f32, and zero-pad the hidden dim to 128 so the
    fc1 output and fc2 weight row are dense vregs.  Zero padding is numerically
    exact through ReLU and the second contraction."""
    hid, fin = w1.shape
    out = w2.shape[0]
    assert out == 1, "kernel assumes FractionalNet output_size == 1"
    assert hid <= HID_PAD
    w1p = jnp.zeros((fin, HID_PAD), jnp.float32).at[:, :hid].set(
        jnp.asarray(w1, jnp.float32).T)
    b1p = jnp.zeros((1, HID_PAD), jnp.float32).at[0, :hid].set(
        jnp.asarray(b1, jnp.float32))
    w2p = jnp.zeros((1, HID_PAD), jnp.float32).at[0, :hid].set(
        jnp.asarray(w2, jnp.float32)[0])
    b2p = jnp.asarray(b2, jnp.float32).reshape(1, 1)
    return w1p, b1p, w2p, b2p


@jax.jit
def fractional_net_forward(x, w1p, b1p, w2p, b2p):
    """x: [B, in_features] (unpadded). Params from prepare_fractional_net_params."""
    B, fin = x.shape
    hid_pad = w1p.shape[1]
    tb = _choose_batch_tile(B)
    grid_n = pl.cdiv(B, tb)

    flops = 2 * B * fin * hid_pad + 2 * B * hid_pad
    bytes_accessed = 4 * (B * fin + B + fin * hid_pad + 2 * hid_pad + 1)

    out_rows = pl.pallas_call(
        fractional_net_kernel,
        out_shape=jax.ShapeDtypeStruct((grid_n, 1, tb), jnp.float32),
        grid=(grid_n,),
        in_specs=[
            pl.BlockSpec((tb, fin), lambda i: (i, 0)),          # x tile (double-buffered; partial last block OK)
            pl.BlockSpec((fin, hid_pad), lambda i: (0, 0)),     # w1 (resident)
            pl.BlockSpec((1, hid_pad), lambda i: (0, 0)),       # b1 row (resident)
            pl.BlockSpec((1, hid_pad), lambda i: (0, 0)),       # w2 row (resident)
            pl.BlockSpec(memory_space=pltpu.MemorySpace.SMEM),  # b2 scalar in SMEM
        ],
        out_specs=pl.BlockSpec((1, 1, tb), lambda i: (i, 0, 0)),  # lane-dense row per tile
        compiler_params=pltpu.CompilerParams(
            dimension_semantics=("parallel",)),                 # shard batch over TCs (v7x)
        cost_estimate=pl.CostEstimate(
            flops=flops, transcendentals=0, bytes_accessed=bytes_accessed),
    )(x.astype(jnp.float32), w1p, b1p, w2p, b2p)

    # Free layout plumbing: (grid, 1, TB) lane-dense rows -> (B, 1) column.  Rows past
    # B (garbage from the partial final block) are sliced off before anything reads them.
    return out_rows.reshape(grid_n * tb, 1)[:B]


def make_fractional_linear_params(key, in_features, out_features):
    """Deterministically emulate FractionalLinear.__init__:
    weight[i,j] = numerator / denominator with numerator in [-100, 100],
    denominator in [1, 100] (exact rational value cast to float32)."""
    k_wn, k_wd, k_bn, k_bd = jax.random.split(key, 4)
    w_num = jax.random.randint(k_wn, (out_features, in_features), -100, 101)
    w_den = jax.random.randint(k_wd, (out_features, in_features), 1, 101)
    b_num = jax.random.randint(k_bn, (out_features,), -100, 101)
    b_den = jax.random.randint(k_bd, (out_features,), 1, 101)
    weight = w_num.astype(jnp.float32) / w_den.astype(jnp.float32)
    bias = b_num.astype(jnp.float32) / b_den.astype(jnp.float32)
    return weight, bias


if __name__ == "__main__":
    input_size, hidden_size, output_size = 10, 20, 1
    batch = 2

    key = jax.random.PRNGKey(0)
    k_x, k_fc1, k_fc2 = jax.random.split(key, 3)

    # Parameters (synthetic, deterministic "fractional" init), prepared once at init.
    w1, b1 = make_fractional_linear_params(k_fc1, input_size, hidden_size)
    w2, b2 = make_fractional_linear_params(k_fc2, hidden_size, output_size)
    w1p, b1p, w2p, b2p = prepare_fractional_net_params(w1, b1, w2, b2)

    # Input.
    x = jax.random.normal(k_x, (batch, input_size), dtype=jnp.float32)

    # Pallas kernel forward.
    out = fractional_net_forward(x, w1p, b1p, w2p, b2p)
    out = jax.block_until_ready(out)

    # Pure-JAX reference (same math as the torch Linear -> ReLU -> Linear chain).
    h_ref = jnp.maximum(x @ w1.T + b1, 0.0)
    ref = h_ref @ w2.T + b2
    assert out.shape == (batch, output_size)
    assert jnp.allclose(out, ref, atol=1e-4, rtol=1e-4)

    print("KERNEL_OK")
</pallas_src>

<mosaic_0001>
module attributes {stable_mosaic.version = 11 : i64} {
  func.func @fractional_net_kernel(%arg0: i32, %arg1: memref<2x10xf32, #tpu.memory_space<vmem>>, %arg2: memref<10x128xf32, #tpu.memory_space<vmem>>, %arg3: memref<1x128xf32, #tpu.memory_space<vmem>>, %arg4: memref<1x128xf32, #tpu.memory_space<vmem>>, %arg5: memref<1x1xf32, #tpu.memory_space<smem>>, %arg6: memref<1x1x2xf32, #tpu.memory_space<vmem>>) attributes {dimension_semantics = [#tpu.dimension_semantics<parallel>], iteration_bounds = array<i64: 1>, scalar_prefetch = 0 : i64, scratch_operands = 0 : i64, tpu.core_type = #tpu.core_type<tc>, window_params = [{transform_indices = @transform_0, window_bounds = array<i64: 2, 10>}, {pipeline_mode = #tpu.pipeline_mode<synchronous>, transform_indices = @transform_1, window_bounds = array<i64: 10, 128>}, {pipeline_mode = #tpu.pipeline_mode<synchronous>, transform_indices = @transform_2, window_bounds = array<i64: 1, 128>}, {pipeline_mode = #tpu.pipeline_mode<synchronous>, transform_indices = @transform_3, window_bounds = array<i64: 1, 128>}, {transform_indices = @transform_4, window_bounds = array<i64: 1, 1>}, {transform_indices = @transform_5, window_bounds = array<i64: 1, 1, 2>}]} {
    %c0 = arith.constant 0 : index
    %c0_0 = arith.constant 0 : index
    %0 = vector.load %arg1[%c0, %c0_0] : memref<2x10xf32, #tpu.memory_space<vmem>>, vector<2x10xf32>
    %c0_1 = arith.constant 0 : index
    %c0_2 = arith.constant 0 : index
    %1 = vector.load %arg2[%c0_1, %c0_2] : memref<10x128xf32, #tpu.memory_space<vmem>>, vector<10x128xf32>
    %cst = arith.constant dense<0.000000e+00> : vector<2x128xf32>
    %2 = tpu.matmul %0, %1, %cst {dimension_numbers = #tpu.dot_dimension_numbers<[1], [0], [0], [1], [0, 0, 1, 1], [], []>} : vector<2x10xf32>, vector<10x128xf32>, vector<2x128xf32> -> vector<2x128xf32>
    %c0_3 = arith.constant 0 : index
    %c0_4 = arith.constant 0 : index
    %3 = vector.load %arg3[%c0_3, %c0_4] : memref<1x128xf32, #tpu.memory_space<vmem>>, vector<1x128xf32>
    %4 = vector.broadcast %3 : vector<1x128xf32> to vector<2x128xf32>
    %5 = arith.addf %2, %4 : vector<2x128xf32>
    %cst_5 = arith.constant 0.000000e+00 : f32
    %6 = vector.broadcast %cst_5 : f32 to vector<2x128xf32>
    %7 = arith.maximumf %5, %6 : vector<2x128xf32>
    %c0_6 = arith.constant 0 : index
    %c0_7 = arith.constant 0 : index
    %8 = vector.load %arg4[%c0_6, %c0_7] : memref<1x128xf32, #tpu.memory_space<vmem>>, vector<1x128xf32>
    %cst_8 = arith.constant dense<0.000000e+00> : vector<1x2xf32>
    %9 = tpu.matmul %8, %7, %cst_8 {dimension_numbers = #tpu.dot_dimension_numbers<[1], [1], [0], [0], [0, 0, 1, 0], [], []>} : vector<1x128xf32>, vector<2x128xf32>, vector<1x2xf32> -> vector<1x2xf32>
    %c0_9 = arith.constant 0 : index
    %c0_10 = arith.constant 0 : index
    %10 = memref.load %arg5[%c0_9, %c0_10] : memref<1x1xf32, #tpu.memory_space<smem>>
    %11 = vector.broadcast %10 : f32 to vector<1x2xf32>
    %12 = arith.addf %9, %11 : vector<1x2xf32>
    %13 = vector.shape_cast %12 : vector<1x2xf32> to vector<1x1x2xf32>
    %c0_11 = arith.constant 0 : index
    %c0_12 = arith.constant 0 : index
    %c0_13 = arith.constant 0 : index
    %14 = vector.load %arg6[%c0_11, %c0_12, %c0_13] : memref<1x1x2xf32, #tpu.memory_space<vmem>>, vector<1x1x2xf32>
    tpu.vector_store %arg6[%c0_11, %c0_12, %c0_13], %13 {strides = array<i32>} : memref<1x1x2xf32, #tpu.memory_space<vmem>>, vector<1x1x2xf32>,
    return
  }
  func.func @transform_0(%arg0: i32) -> (i32, i32) {
    %c0_i32 = arith.constant 0 : i32
    %c0_i32_0 = arith.constant 0 : i32
    return %arg0, %c0_i32 : i32, i32
  }
  func.func @transform_1(%arg0: i32) -> (i32, i32) {
    %c0_i32 = arith.constant 0 : i32
    %c0_i32_0 = arith.constant 0 : i32
    %c0_i32_1 = arith.constant 0 : i32
    return %c0_i32, %c0_i32_0 : i32, i32
  }
  func.func @transform_2(%arg0: i32) -> (i32, i32) {
    %c0_i32 = arith.constant 0 : i32
    %c0_i32_0 = arith.constant 0 : i32
    %c0_i32_1 = arith.constant 0 : i32
    return %c0_i32, %c0_i32_0 : i32, i32
  }
  func.func @transform_3(%arg0: i32) -> (i32, i32) {
    %c0_i32 = arith.constant 0 : i32
    %c0_i32_0 = arith.constant 0 : i32
    %c0_i32_1 = arith.constant 0 : i32
    return %c0_i32, %c0_i32_0 : i32, i32
  }
  func.func @transform_4(%arg0: i32) -> (i32, i32) {
    %c0_i32 = arith.constant 0 : i32
    %c0_i32_0 = arith.constant 0 : i32
    %c0_i32_1 = arith.constant 0 : i32
    return %c0_i32, %c0_i32_0 : i32, i32
  }
  func.func @transform_5(%arg0: i32) -> (i32, i32, i32) {
    %c0_i32 = arith.constant 0 : i32
    %c0_i32_0 = arith.constant 0 : i32
    %c0_i32_1 = arith.constant 0 : i32
    return %arg0, %c0_i32, %c0_i32_0 : i32, i32, i32
  }
}

</mosaic_0001>

<bundles_post_ra>
// kernel: fractional_net_forward.1
= control target key start
LH: loop header
LB: loop body
LE: loop exit
PB: predicated region body
PF: predicated region fallthrough
CT: control target
= control target key end

     0   :  { %11 = vsyncpa [#allocation4], 0  ;;  %s369_s0 = inlined_call_operand.vmem [shape: f32[2,10], index: 0, kind: input, shape index: {}]   ;;  %s370_s1 = inlined_call_operand.hbm [shape: f32[10,128], index: 1, kind: input, shape index: {}]   ;;  %s371_s2 = inlined_call_operand.vmem [shape: f32[1,128], index: 2, kind: input, shape index: {}]   ;;  %s372_s3 = inlined_call_operand.vmem [shape: f32[1,128], index: 3, kind: input, shape index: {}]   ;;  %s373_s4 = inlined_call_operand.<no memory space> [shape: f32[1,1], index: 4, kind: input, shape index: {}]   ;;  %s374_s5 = inlined_call_operand.hbm [shape: f32[1,1,2], index: 5, kind: output, shape index: {}]  }
   0x1   :  { %12 = vsyncpa [#allocation5], 0  ;;  %s295_s18 = smov [#allocation3]   ;;  %s247_s22 = scalar_lea.hbm %s370_s1, 256 }
   0x2   :  { %s20_s19 = sshll.u32 %s295_s18, 4  ;;  %p248_p0 = scmp.ne.s32.totalorder %s370_s1, %s247_s22  ;;  %s21_s19 = int_to_ptr.vmem [resolvable:$true] %s20_s19 }
   0x3   :  { %p251_p1 = scmp.lt.u32.totalorder %s247_s22, %s370_s1 }
   0x5   :  { %p253_p2 = pnand %p251_p1, %p248_p0 }
   0x7   :  { %256 = shalt.err (!%p253_p2)
}
   0x8   :  { %s257_s27 = scalar_lea.vmem %s21_s19, 256  ;;  %p262_p4 = scmp.lt.s32.totalorder %s21_s19, %s21_s19 }
   0x9   :  { %p258_p3 = scmp.ne.s32.totalorder %s21_s19, %s257_s27  ;;  %p263_p5 = scmp.lt.s32.totalorder %s257_s27, %s257_s27 }
   0xb   :  { %p264_p6 = por %p263_p5, %p262_p4 }
   0xd   :  { %p265_p7 = pnand %p264_p6, %p258_p3 }
   0xf   :  { %268 = shalt.err (!%p265_p7)
}
  0x10   :  { %s296_s28 = smov 128   ;;  %s297_s29 = smov 8  }
  0x11   :  { %26 = dma.hbm_to_vmem [thread:$0]  %s370_s1, 256, %s21_s19, [#allocation4], %s296_s28, %s296_s28, %s297_s29  }
  0x12   :  { %291 = dma.done.wait [#allocation4], 256  }
  0x13   :  { %292 = vsyncadd [#allocation4], 4294967040  ;;  %v298_v0 = vmov 0.0|0.0   ;;  %vm299_vm0 = vmmov 0   ;;  %v300_v1 = vmov 0.0   ;;  %vm50_vm1 = vcmask 1041408  }
  0x14   :  { %235 = vmatprep.subr.bf16.mxu0 %v298_v0  ;;  %227 = vmatprep.mubr.msk.f32.mxu0 %vm299_vm0, %v300_v1  ;;  %v37_v2 = vld [vmem:[#allocation3] sm:$0xff]  ;;  %v38_v3 = vld [vmem:[#allocation3 + $0x8] sm:$0x3]  ;;  %vm301_vm2 = vmmov 1   ;;  %vm46_vm4 = vcmask 80896   ;;  %v127_v12 = vstv %s373_s4  ;;  %vm198_vm5 = vcmask 8192  }
  0x15   :  { %230 = vmatprep.subr.mxu1 %v300_v1  ;;  %232 = vmatprep.mubr.msk.f32.mxu1 %vm299_vm0, %v300_v1  ;;  %vm237_vm3 = vmpackc.low %vm50_vm1, %vm301_vm2  ;;  %v236_v4 = vpack.c.bf16 %v38_v3, %v37_v2  ;;  %v36_v5 = vld [vmem:[%s369_s0] sm:$0x3]  ;;  %s302_s0 = smov [#allocation6]  }
  0x16   :  { %v215_v6 = vld [vmem:[%s371_s2] ss:$0 sm:$0xff]  ;;  %s206_s14 = sshll.u32 %s302_s0, 4  ;;  %s207_s14 = int_to_ptr.vmem [resolvable:$true] %s206_s14 }
  0x17   :  { %238 = vmatpush3.bf16.msk.msra.mxu0 %vm237_vm3, %v236_v4  ;;  %v125_v11 = vld [vmem:[%s372_s3] sm:$0x1]  ;;  %s269_s2 = scalar_lea.vmem %s207_s14, 16  ;;  %s273_s15 = scalar_lea.vmem %s207_s14, 32 }
  0x18   :  { %p270_p8 = scmp.ne.s32.totalorder %s207_s14, %s269_s2  ;;  %p274_p9 = scmp.lt.s32.totalorder %s207_s14, %s207_s14 }
  0x19   :  { %p275_p10 = scmp.lt.s32.totalorder %s273_s15, %s269_s2 }
  0x1a   :  { %228 = vmatmul.mubr.msk.f32.vlgmr.msra.gmra.mrb[0].mxu0 %vm46_vm4, %v36_v5 }
  0x1b   :  { %p276_p11 = por %p275_p10, %p274_p9 }
  0x1d   :  { %p277_p12 = pnand %p276_p11, %p270_p8 }
  0xed   :  { %v120_v7 = vpop.f32.mrb[0].mxu0 }
  0xee   :  { %v121_v8 = vadd.f32 %v215_v6, %v120_v7  ;;  %v229_v9 = vpop.f32.mrb[1].mxu0 }
  0xf0   :  { %v124_v10 = vmax.f32 %v121_v8, 0.0 }
  0xf2   :  { %231 = vmatpush3.xpose.msra.mxu1 %v124_v10 }
  0xf5   :  { %233 = vmatmul.mubr.f32.vlgmr.msra.gmra.mrb[0].mxu1 %v125_v11 }
 0x1c8   :  { %v194_v13 = vpop.f32.mrb[0].mxu1 }
 0x1c9   :  { %v195_v14 = vadd.f32 %v194_v13, %v127_v12  ;;  %v234_v15 = vpop.f32.mrb[1].mxu1 }
 0x1cb   :  { %199 = vst.msk [vmem:[#allocation6] sm:$0x1] %vm198_vm5, %v195_v14 }
 0x1cc   :  { %280 = shalt.err (!%p277_p12)
}
 0x1cd   :  { %s281_s4 = scalar_lea.hbm %s374_s5, 16 }
 0x1ce   :  { %p282_p13 = scmp.ne.s32.totalorder %s374_s5, %s281_s4  ;;  %p285_p0 = scmp.lt.u32.totalorder %s281_s4, %s374_s5 }
 0x1d0   :  { %p287_p1 = pnand %p285_p0, %p282_p13 }
 0x1d2   :  { %290 = shalt.err (!%p287_p1)
}
 0x1d3   :  { %209 = dma.vmem_to_hbm [thread:$0]  %s207_s14, 16, %s374_s5, [#allocation5]  }
 0x1d4   :  { %293 = dma.done.wait [#allocation5], 16  }
 0x1d5   :  { %294 = vsyncadd [#allocation5], 4294967280 }
 0x1d6   :  { %213 = vsyncpa [#allocation4], 1 }
 0x1d7   :  { %214 = vsyncpa [#allocation5], 1 }

</bundles_post_ra>
